<compile_context>
chip_gen: v5e
topology: v5e:2x2
jax: 0.10.0
libtpu: 0.0.40
codegen_flags: <defaults>
</compile_context>

<pallas_src>
import functools

import numpy as np

import jax
import jax.numpy as jnp
from jax.experimental import pallas as pl
from jax.experimental.pallas import tpu as pltpu


def _round_up(x: int, m: int) -> int:
    return ((x + m - 1) // m) * m


def _autocorr_kernel(x_ref, sel_ref, o_ref, *, n_lags: int, t_valid: int, t_pad: int):
    x = x_ref[...].astype(jnp.float32)                 # (TB, T_pad); pad lanes are 0
    tb = x.shape[0]

    # Per-row mean over the T valid lanes (pad lanes are zero -> plain sum works).
    mean = jnp.sum(x, axis=1, keepdims=True) * (1.0 / float(t_valid))     # (TB, 1)

    # Center, then re-zero the pad lanes so rolled wrap-around terms vanish.
    lane = jax.lax.broadcasted_iota(jnp.int32, (tb, t_pad), 1)
    xc = jnp.where(lane < t_valid, x - mean, 0.0)      # (TB, T_pad)

    # Fixed-shape lag products; shift = t_pad - k is positive and, with the
    # >= n_lags zero pad, yields exactly sum_t xc[t]*xc[t+k] after reduction.
    prods = [xc * xc]                                  # k = 0
    for k in range(1, n_lags + 1):                     # small static n_lags -> unroll
        prods.append(xc * pltpu.roll(xc, shift=t_pad - k, axis=1))
    prod_cat = jnp.concatenate(prods, axis=1)          # (TB, (n_lags+1)*T_pad)

    # One MXU contraction performs every lane reduction; the selector columns
    # already carry the per-lag normalization scale.
    acf = jnp.dot(prod_cat, sel_ref[...],
                  preferred_element_type=jnp.float32)  # (TB, n_lags+1)

    inv0 = pl.reciprocal(acf[:, 0:1], approx=False)    # exact, keeps tight accuracy
    o_ref[...] = (acf[:, 1:] * inv0).astype(o_ref.dtype)


def autocorr_seq(X: jax.Array, n_lags: int, unbiased: bool = False) -> jax.Array:
    """Pallas implementation of AutocorrSeq.forward."""
    if X.ndim == 1:
        X2 = X.reshape(1, -1)
    else:
        X2 = X.reshape(X.shape[0], -1)
    B, T = X2.shape
    L = int(n_lags)

    # Lane padding: 128-aligned and at least n_lags zero lanes beyond T.
    T_pad = _round_up(T + L, 128)

    # Batch tile: multiple of 8 sublanes, sized so the per-step f32 working set
    # (~(L+3) tiles of (TB, T_pad): xc + products + lane-concat) stays well under
    # the VMEM budget even on v7x (64 MiB physical / 32 MiB scoped).
    budget_bytes = 8 * 1024 * 1024
    tb = budget_bytes // max(1, (L + 3) * T_pad * 4)
    tb = max(8, min(256, (tb // 8) * 8))
    TB = min(tb, _round_up(B, 8))
    B_pad = _round_up(B, TB)

    # Zero-pad batch (to the tile) and time (to T_pad) on the host, keeping the
    # native dtype -- the kernel upcasts to f32 in VMEM.  Padded batch rows
    # produce nan (0/0) and are sliced off below.
    Xp = jnp.pad(X2, ((0, B_pad - B), (0, T_pad - T)))

    # Block-selector matrix: column k sums lag-k's T_pad lanes, scaled by the
    # folded normalization.  Biased: denominators cancel in acf_k/acf_0 -> 1.
    sel_np = np.zeros(((L + 1) * T_pad, L + 1), dtype=np.float32)
    for k in range(L + 1):
        if unbiased:
            # T - k <= 0 is undefined in the reference too; emit 0 instead of inf.
            scale = float(T) / float(T - k) if (T - k) > 0 else 0.0
        else:
            scale = 1.0
        sel_np[k * T_pad:(k + 1) * T_pad, k] = scale
    sel = jnp.asarray(sel_np)

    kernel = functools.partial(_autocorr_kernel, n_lags=L, t_valid=T, t_pad=T_pad)

    out = pl.pallas_call(
        kernel,
        out_shape=jax.ShapeDtypeStruct((B_pad, L), jnp.float32),
        grid_spec=pltpu.PrefetchScalarGridSpec(
            num_scalar_prefetch=0,
            grid=(B_pad // TB,),
            in_specs=[
                pl.BlockSpec((TB, T_pad), lambda i: (i, 0)),
                pl.BlockSpec(((L + 1) * T_pad, L + 1), lambda i: (0, 0)),
            ],
            out_specs=pl.BlockSpec((TB, L), lambda i: (i, 0)),
        ),
        compiler_params=pltpu.CompilerParams(
            dimension_semantics=("parallel",),
            vmem_limit_bytes=32 * 1024 * 1024,
        ),
    )(Xp, sel)

    return out[:B]


def _reference(X, n_lags, unbiased=False):
    """Pure-JAX reference mirroring the PyTorch code."""
    if X.ndim == 1:
        X = X.reshape(1, -1)
    else:
        X = X.reshape(X.shape[0], -1)
    X = X.astype(jnp.float32)
    T = X.shape[1]
    xc = X - jnp.mean(X, axis=1, keepdims=True)
    acfs = []
    for k in range(n_lags + 1):
        denom = (T - k) if unbiased else T
        acfs.append(jnp.sum(xc[:, : T - k] * xc[:, k:], axis=1) / denom)
    acf = jnp.stack(acfs, axis=1)
    return acf[:, 1:] / acf[:, 0:1]


if __name__ == "__main__":
    key = jax.random.PRNGKey(0)
    B, T = 2, 64
    n_lags = 8
    X = jax.random.normal(key, (B, T), dtype=jnp.float32)

    out = autocorr_seq(X, n_lags=n_lags, unbiased=False)
    out = jax.block_until_ready(out)
    ref = _reference(X, n_lags=n_lags, unbiased=False)
    assert out.shape == (B, n_lags), out.shape
    # 5e-3 tolerance: the reductions run on the MXU; if the f32 operands are
    # routed through a bf16 pass the sums can differ from the exact-f32
    # reference by ~1e-3 relative (usually they agree to ~1e-6).
    assert jnp.allclose(out, ref, atol=5e-3, rtol=5e-3), (out, ref)

    # Exercise the unbiased normalization path as well (same compiled kernel).
    out_u = jax.block_until_ready(autocorr_seq(X, n_lags=n_lags, unbiased=True))
    ref_u = _reference(X, n_lags=n_lags, unbiased=True)
    assert jnp.allclose(out_u, ref_u, atol=5e-3, rtol=5e-3), (out_u, ref_u)

    print("KERNEL_OK")
</pallas_src>

<mosaic_0001>
module attributes {stable_mosaic.version = 11 : i64} {
  func.func @_autocorr_kernel(%arg0: i32, %arg1: memref<8x128xf32, #tpu.memory_space<vmem>>, %arg2: memref<1152x9xf32, #tpu.memory_space<vmem>>, %arg3: memref<8x8xf32, #tpu.memory_space<vmem>>) attributes {dimension_semantics = [#tpu.dimension_semantics<parallel>], iteration_bounds = array<i64: 1>, scalar_prefetch = 0 : i64, scratch_operands = 0 : i64, tpu.core_type = #tpu.core_type<tc>, window_params = [{transform_indices = @transform_0, window_bounds = array<i64: 8, 128>}, {pipeline_mode = #tpu.pipeline_mode<synchronous>, transform_indices = @transform_1, window_bounds = array<i64: 1152, 9>}, {transform_indices = @transform_2, window_bounds = array<i64: 8, 8>}]} {
    %c0 = arith.constant 0 : index
    %c0_0 = arith.constant 0 : index
    %0 = vector.load %arg1[%c0, %c0_0] : memref<8x128xf32, #tpu.memory_space<vmem>>, vector<8x128xf32>
    %cst = arith.constant dense<0.000000e+00> : vector<8xf32>
    %1 = vector.multi_reduction <add>, %0, %cst [1] : vector<8x128xf32> to vector<8xf32>
    %2 = vector.shape_cast %1 : vector<8xf32> to vector<8x1xf32>
    %cst_1 = arith.constant 1.562500e-02 : f32
    %3 = vector.broadcast %cst_1 : f32 to vector<8x1xf32>
    %4 = arith.mulf %2, %3 : vector<8x1xf32>
    %5 = tpu.iota {dimensions = array<i32: 1>} : vector<8x128xi32>
    %c64_i32 = arith.constant 64 : i32
    %6 = vector.broadcast %c64_i32 : i32 to vector<8x128xi32>
    %7 = arith.cmpi slt, %5, %6 : vector<8x128xi32>
    %8 = vector.broadcast %4 : vector<8x1xf32> to vector<8x128xf32>
    %9 = arith.subf %0, %8 : vector<8x128xf32>
    %cst_2 = arith.constant 0.000000e+00 : f32
    %10 = vector.broadcast %cst_2 : f32 to vector<8x128xf32>
    %11 = arith.select %7, %9, %10 : vector<8x128xi1>, vector<8x128xf32>
    %12 = arith.mulf %11, %11 : vector<8x128xf32>
    %c127_i32 = arith.constant 127 : i32
    %13 = tpu.dynamic_rotate %11 by %c127_i32 dim 1 : vector<8x128xf32>, i32 -> vector<8x128xf32>
    %14 = arith.mulf %11, %13 : vector<8x128xf32>
    %c126_i32 = arith.constant 126 : i32
    %15 = tpu.dynamic_rotate %11 by %c126_i32 dim 1 : vector<8x128xf32>, i32 -> vector<8x128xf32>
    %16 = arith.mulf %11, %15 : vector<8x128xf32>
    %c125_i32 = arith.constant 125 : i32
    %17 = tpu.dynamic_rotate %11 by %c125_i32 dim 1 : vector<8x128xf32>, i32 -> vector<8x128xf32>
    %18 = arith.mulf %11, %17 : vector<8x128xf32>
    %c124_i32 = arith.constant 124 : i32
    %19 = tpu.dynamic_rotate %11 by %c124_i32 dim 1 : vector<8x128xf32>, i32 -> vector<8x128xf32>
    %20 = arith.mulf %11, %19 : vector<8x128xf32>
    %c123_i32 = arith.constant 123 : i32
    %21 = tpu.dynamic_rotate %11 by %c123_i32 dim 1 : vector<8x128xf32>, i32 -> vector<8x128xf32>
    %22 = arith.mulf %11, %21 : vector<8x128xf32>
    %c122_i32 = arith.constant 122 : i32
    %23 = tpu.dynamic_rotate %11 by %c122_i32 dim 1 : vector<8x128xf32>, i32 -> vector<8x128xf32>
    %24 = arith.mulf %11, %23 : vector<8x128xf32>
    %c121_i32 = arith.constant 121 : i32
    %25 = tpu.dynamic_rotate %11 by %c121_i32 dim 1 : vector<8x128xf32>, i32 -> vector<8x128xf32>
    %26 = arith.mulf %11, %25 : vector<8x128xf32>
    %c120_i32 = arith.constant 120 : i32
    %27 = tpu.dynamic_rotate %11 by %c120_i32 dim 1 : vector<8x128xf32>, i32 -> vector<8x128xf32>
    %28 = arith.mulf %11, %27 : vector<8x128xf32>
    %29 = tpu.concatenate %12, %14, %16, %18, %20, %22, %24, %26, %28 in 1 : vector<8x128xf32>, vector<8x128xf32>, vector<8x128xf32>, vector<8x128xf32>, vector<8x128xf32>, vector<8x128xf32>, vector<8x128xf32>, vector<8x128xf32>, vector<8x128xf32> -> vector<8x1152xf32>
    %c0_3 = arith.constant 0 : index
    %c0_4 = arith.constant 0 : index
    %30 = vector.load %arg2[%c0_3, %c0_4] : memref<1152x9xf32, #tpu.memory_space<vmem>>, vector<1152x9xf32>
    %cst_5 = arith.constant dense<0.000000e+00> : vector<8x9xf32>
    %31 = tpu.matmul %29, %30, %cst_5 {dimension_numbers = #tpu.dot_dimension_numbers<[1], [0], [0], [1], [0, 0, 1, 1], [], []>} : vector<8x1152xf32>, vector<1152x9xf32>, vector<8x9xf32> -> vector<8x9xf32>
    %32 = vector.extract_strided_slice %31 {offsets = [0, 0], sizes = [8, 1], strides = [1, 1]} : vector<8x9xf32> to vector<8x1xf32>
    %33 = tpu.reciprocal %32 : vector<8x1xf32> -> vector<8x1xf32>
    %34 = vector.extract_strided_slice %31 {offsets = [0, 1], sizes = [8, 8], strides = [1, 1]} : vector<8x9xf32> to vector<8x8xf32>
    %35 = vector.broadcast %33 : vector<8x1xf32> to vector<8x8xf32>
    %36 = arith.mulf %34, %35 : vector<8x8xf32>
    %c0_6 = arith.constant 0 : index
    %c0_7 = arith.constant 0 : index
    %37 = vector.load %arg3[%c0_6, %c0_7] : memref<8x8xf32, #tpu.memory_space<vmem>>, vector<8x8xf32>
    tpu.vector_store %arg3[%c0_6, %c0_7], %36 {strides = array<i32>} : memref<8x8xf32, #tpu.memory_space<vmem>>, vector<8x8xf32>,
    return
  }
  func.func @transform_0(%arg0: i32) -> (i32, i32) {
    %c0_i32 = arith.constant 0 : i32
    %c0_i32_0 = arith.constant 0 : i32
    return %arg0, %c0_i32 : i32, i32
  }
  func.func @transform_1(%arg0: i32) -> (i32, i32) {
    %c0_i32 = arith.constant 0 : i32
    %c0_i32_0 = arith.constant 0 : i32
    %c0_i32_1 = arith.constant 0 : i32
    return %c0_i32, %c0_i32_0 : i32, i32
  }
  func.func @transform_2(%arg0: i32) -> (i32, i32) {
    %c0_i32 = arith.constant 0 : i32
    %c0_i32_0 = arith.constant 0 : i32
    return %arg0, %c0_i32 : i32, i32
  }
}

</mosaic_0001>

<bundles_post_ra>
// kernel: tpu_custom_call.1
= control target key start
LH: loop header
LB: loop body
LE: loop exit
PB: predicated region body
PF: predicated region fallthrough
CT: control target
= control target key end

     0   :  { %s941_s0 = inlined_call_operand.vmem [shape: f32[8,128], index: 0, kind: input, shape index: {}]   ;;  %s942_s1 = inlined_call_operand.vmem [shape: f32[1152,9], index: 1, kind: input, shape index: {}]   ;;  %s943_s2 = inlined_call_operand.hbm [shape: f32[8,8], index: 2, kind: output, shape index: {}]  }
   0x1   :  { %v480_v0 = vld [vmem:[%s941_s0] sm:$0xff]  ;;  %v61_v1 = vld [vmem:[%s942_s1 + $0x78] sm:$0xff]  ;;  %v60_v2 = vld [vmem:[%s942_s1 + $0x70] sm:$0xff] }
   0x2   :  { %13 = vadd.xlane.f32.xlu0 %v480_v0  ;;  %190 = vmatpush.msra.mxu0 %v61_v1  ;;  %v59_v3 = vld [vmem:[%s942_s1 + $0x68] sm:$0xff]  ;;  %v58_v4 = vld [vmem:[%s942_s1 + $0x60] sm:$0xff] }
   0x4   :  { %191 = vmatpush.msra.mxu0 %v60_v2 }
   0x5   :  { %7 = vsyncpa [#allocation3], 0  ;;  %v57_v5 = vld [vmem:[%s942_s1 + $0x58] sm:$0xff]  ;;  %v56_v6 = vld [vmem:[%s942_s1 + $0x50] sm:$0xff]  ;;  %v16_v17 = vlaneseq  ;;  %s452_s15 = smov 122   ;;  %s453_s16 = smov 125  }
   0x6   :  { %192 = vmatpush.msra.mxu0 %v59_v3  ;;  %v55_v7 = vld [vmem:[%s942_s1 + $0x48] sm:$0xff]  ;;  %v54_v8 = vld [vmem:[%s942_s1 + $0x40] sm:$0xff]  ;;  %v53_v9 = vld [vmem:[%s942_s1 + $0x38] sm:$0xff]  ;;  %s454_s20 = smov 126   ;;  %s455_s17 = smov 124   ;;  %vm394_vm5 = vcmask 64512  }
   0x7   :  { %v52_v10 = vld [vmem:[%s942_s1 + $0x30] sm:$0xff]  ;;  %v51_v11 = vld [vmem:[%s942_s1 + $0x28] sm:$0xff]  ;;  %v50_v12 = vld [vmem:[%s942_s1 + $0x20] sm:$0xff]  ;;  %v17_v18 = vand.u32 127, %v16_v17  ;;  %s456_s18 = smov 127   ;;  %s457_s0 = smov 123  }
   0x8   :  { %193 = vmatpush.msra.mxu0 %v58_v4  ;;  %v49_v13 = vld [vmem:[%s942_s1 + $0x18] sm:$0xff]  ;;  %v48_v14 = vld [vmem:[%s942_s1 + $0x10] sm:$0xff]  ;;  %v47_v15 = vld [vmem:[%s942_s1 + $0x8] sm:$0xff]  ;;  %s458_s19 = smov 121   ;;  %s459_s24 = smov 120  }
   0x9   :  { %v46_v16 = vld [vmem:[%s942_s1] sm:$0xff]  ;;  %v93_v19 = vld [vmem:[%s942_s1 + $0x178] sm:$0xff]  ;;  %v92_v20 = vld [vmem:[%s942_s1 + $0x170] sm:$0xff]  ;;  %vm18_vm0 = vcmp.lt.s32.totalorder %v17_v18, 64  ;;  %s403_s26 = sshll.u32 %s943_s2, 4  ;;  %s404_s26 = int_to_ptr.hbm [resolvable:$true] %s403_s26 }
   0xa   :  { %194 = vmatpush.msra.mxu0 %v57_v5  ;;  %230 = vmatpush.msra.mxu2 %v93_v19  ;;  %v125_v21 = vld [vmem:[%s942_s1 + $0x278] sm:$0xff]  ;;  %v91_v24 = vld [vmem:[%s942_s1 + $0x168] sm:$0xff]  ;;  %v124_v26 = vld [vmem:[%s942_s1 + $0x270] sm:$0xff] }
   0xb   :  { %v77_v22 = vld [vmem:[%s942_s1 + $0xf8] sm:$0xff]  ;;  %v76_v28 = vld [vmem:[%s942_s1 + $0xf0] sm:$0xff]  ;;  %v90_v30 = vld [vmem:[%s942_s1 + $0x160] sm:$0xff] }
   0xc   :  { %195 = vmatpush.msra.mxu0 %v56_v6  ;;  %210 = vmatpush.msra.mxu1 %v77_v22  ;;  %v109_v25 = vld [vmem:[%s942_s1 + $0x1f8] sm:$0xff]  ;;  %v108_v29 = vld [vmem:[%s942_s1 + $0x1f0] sm:$0xff]  ;;  %v123_v31 = vld [vmem:[%s942_s1 + $0x268] sm:$0xff] }
   0xd   :  { %231 = vmatpush.msra.mxu2 %v92_v20  ;;  %250 = vmatpush.msra.mxu3 %v109_v25  ;;  %v75_v32 = vld [vmem:[%s942_s1 + $0xe8] sm:$0xff]  ;;  %v89_v35 = vld [vmem:[%s942_s1 + $0x158] sm:$0xff]  ;;  %v74_v37 = vld [vmem:[%s942_s1 + $0xe0] sm:$0xff] }
   0xe   :  { %196 = vmatpush.msra.mxu0 %v55_v7  ;;  %211 = vmatpush.msra.mxu1 %v76_v28  ;;  %v107_v34 = vld [vmem:[%s942_s1 + $0x1e8] sm:$0xff]  ;;  %v88_v39 = vld [vmem:[%s942_s1 + $0x150] sm:$0xff]  ;;  %v122_v40 = vld [vmem:[%s942_s1 + $0x260] sm:$0xff] }
   0xf   :  { %232 = vmatpush.msra.mxu2 %v91_v24  ;;  %251 = vmatpush.msra.mxu3 %v108_v29  ;;  %v106_v41 = vld [vmem:[%s942_s1 + $0x1e0] sm:$0xff]  ;;  %v73_v42 = vld [vmem:[%s942_s1 + $0xd8] sm:$0xff]  ;;  %v87_v43 = vld [vmem:[%s942_s1 + $0x148] sm:$0xff] }
  0x10   :  { %197 = vmatpush.msra.mxu0 %v54_v8  ;;  %212 = vmatpush.msra.mxu1 %v75_v32  ;;  %v121_v44 = vld [vmem:[%s942_s1 + $0x258] sm:$0xff]  ;;  %v72_v46 = vld [vmem:[%s942_s1 + $0xd0] sm:$0xff]  ;;  %v86_v47 = vld [vmem:[%s942_s1 + $0x140] sm:$0xff] }
  0x11   :  { %233 = vmatpush.msra.mxu2 %v90_v30  ;;  %252 = vmatpush.msra.mxu3 %v107_v34  ;;  %v105_v45 = vld [vmem:[%s942_s1 + $0x1d8] sm:$0xff]  ;;  %v120_v48 = vld [vmem:[%s942_s1 + $0x250] sm:$0xff]  ;;  %v119_v51 = vld [vmem:[%s942_s1 + $0x248] sm:$0xff] }
  0x12   :  { %198 = vmatpush.msra.mxu0 %v53_v9  ;;  %213 = vmatpush.msra.mxu1 %v74_v37  ;;  %v85_v49 = vld [vmem:[%s942_s1 + $0x138] sm:$0xff]  ;;  %v104_v50 = vld [vmem:[%s942_s1 + $0x1d0] sm:$0xff]  ;;  %v71_v52 = vld [vmem:[%s942_s1 + $0xc8] sm:$0xff] }
  0x13   :  { %234 = vmatpush.msra.mxu2 %v89_v35  ;;  %253 = vmatpush.msra.mxu3 %v106_v41  ;;  %v84_v53 = vld [vmem:[%s942_s1 + $0x130] sm:$0xff]  ;;  %v103_v54 = vld [vmem:[%s942_s1 + $0x1c8] sm:$0xff]  ;;  %v118_v55 = vld [vmem:[%s942_s1 + $0x240] sm:$0xff] }
  0x14   :  { %199 = vmatpush.msra.mxu0 %v52_v10  ;;  %214 = vmatpush.msra.mxu1 %v73_v42  ;;  %v70_v56 = vld [vmem:[%s942_s1 + $0xc0] sm:$0xff]  ;;  %v83_v57 = vld [vmem:[%s942_s1 + $0x128] sm:$0xff]  ;;  %v117_v59 = vld [vmem:[%s942_s1 + $0x238] sm:$0xff] }
  0x15   :  { %235 = vmatpush.msra.mxu2 %v88_v39  ;;  %254 = vmatpush.msra.mxu3 %v105_v45  ;;  %v102_v58 = vld [vmem:[%s942_s1 + $0x1c0] sm:$0xff]  ;;  %v69_v60 = vld [vmem:[%s942_s1 + $0xb8] sm:$0xff]  ;;  %v68_v1 = vld [vmem:[%s942_s1 + $0xb0] sm:$0xff] }
  0x16   :  { %200 = vmatpush.msra.mxu0 %v51_v11  ;;  %215 = vmatpush.msra.mxu1 %v72_v46  ;;  %v82_v61 = vld [vmem:[%s942_s1 + $0x120] sm:$0xff]  ;;  %v101_v62 = vld [vmem:[%s942_s1 + $0x1b8] sm:$0xff]  ;;  %v100_v2 = vld [vmem:[%s942_s1 + $0x1b0] sm:$0xff] }
  0x17   :  { %236 = vmatpush.msra.mxu2 %v87_v43  ;;  %255 = vmatpush.msra.mxu3 %v104_v50  ;;  %v81_v63 = vld [vmem:[%s942_s1 + $0x118] sm:$0xff]  ;;  %v80_v3 = vld [vmem:[%s942_s1 + $0x110] sm:$0xff]  ;;  %v115_v4 = vld [vmem:[%s942_s1 + $0x228] sm:$0xff] }
  0x18   :  { %201 = vmatpush.msra.mxu0 %v50_v12  ;;  %216 = vmatpush.msra.mxu1 %v71_v52  ;;  %v67_v5 = vld [vmem:[%s942_s1 + $0xa8] sm:$0xff]  ;;  %v114_v8 = vld [vmem:[%s942_s1 + $0x220] sm:$0xff]  ;;  %v113_v12 = vld [vmem:[%s942_s1 + $0x218] sm:$0xff] }
  0x19   :  { %237 = vmatpush.msra.mxu2 %v86_v47  ;;  %256 = vmatpush.msra.mxu3 %v103_v54  ;;  %v79_v6 = vld [vmem:[%s942_s1 + $0x108] sm:$0xff]  ;;  %v66_v9 = vld [vmem:[%s942_s1 + $0xa0] sm:$0xff]  ;;  %v156_v17 = vld [vmem:[%s942_s1 + $0x370] sm:$0xff] }
  0x1a   :  { %202 = vmatpush.msra.mxu0 %v49_v13  ;;  %217 = vmatpush.msra.mxu1 %v70_v56  ;;  %v99_v7 = vld [vmem:[%s942_s1 + $0x1a8] sm:$0xff]  ;;  %v78_v10 = vld [vmem:[%s942_s1 + $0x100] sm:$0xff]  ;;  %v157_v13 = vld [vmem:[%s942_s1 + $0x378] sm:$0xff] }
  0x1b   :  { %238 = vmatpush.msra.mxu2 %v85_v49  ;;  %257 = vmatpush.msra.mxu3 %v102_v58  ;;  %v98_v11 = vld [vmem:[%s942_s1 + $0x1a0] sm:$0xff]  ;;  %v64_v18 = vld [vmem:[%s942_s1 + $0x90] sm:$0xff]  ;;  %v111_v20 = vld [vmem:[%s942_s1 + $0x208] sm:$0xff] }
  0x1c   :  { %203 = vmatpush.msra.mxu0 %v48_v14  ;;  %218 = vmatpush.msra.mxu1 %v69_v60  ;;  %v65_v14 = vld [vmem:[%s942_s1 + $0x98] sm:$0xff]  ;;  %v96_v19 = vld [vmem:[%s942_s1 + $0x190] sm:$0xff]  ;;  %v63_v22 = vld [vmem:[%s942_s1 + $0x88] sm:$0xff] }
  0x1d   :  { %239 = vmatpush.msra.mxu2 %v84_v53  ;;  %258 = vmatpush.msra.mxu3 %v101_v62  ;;  %v110_v24 = vld [vmem:[%s942_s1 + $0x200] sm:$0xff]  ;;  %v141_v28 = vld [vmem:[%s942_s1 + $0x2f8] sm:$0xff]  ;;  %v152_v32 = vld [vmem:[%s942_s1 + $0x350] sm:$0xff] }
  0x1e   :  { %204 = vmatpush.msra.mxu0 %v47_v15  ;;  %219 = vmatpush.msra.mxu1 %v68_v1  ;;  %v97_v15 = vld [vmem:[%s942_s1 + $0x198] sm:$0xff]  ;;  %v154_v25 = vld [vmem:[%s942_s1 + $0x360] sm:$0xff]  ;;  %v139_v34 = vld [vmem:[%s942_s1 + $0x2e8] sm:$0xff] }
  0x1f   :  { %240 = vmatpush.msra.mxu2 %v83_v57  ;;  %259 = vmatpush.msra.mxu3 %v100_v2  ;;  %v153_v29 = vld [vmem:[%s942_s1 + $0x358] sm:$0xff]  ;;  %v151_v35 = vld [vmem:[%s942_s1 + $0x348] sm:$0xff]  ;;  %v150_v39 = vld [vmem:[%s942_s1 + $0x340] sm:$0xff] }
  0x20   :  { %205 = vmatpush.msra.mxu0 %v46_v16  ;;  %220 = vmatpush.msra.mxu1 %v67_v5  ;;  %v112_v16 = vld [vmem:[%s942_s1 + $0x210] sm:$0xff]  ;;  %v173_v30 = vld [vmem:[%s942_s1 + $0x3f8] sm:$0xff]  ;;  %v171_v37 = vld [vmem:[%s942_s1 + $0x3e8] sm:$0xff] }
  0x21   :  { %241 = vmatpush.msra.mxu2 %v82_v61  ;;  %260 = vmatpush.msra.mxu3 %v99_v7  ;;  %v137_v41 = vld [vmem:[%s942_s1 + $0x2d8] sm:$0xff]  ;;  %v136_v45 = vld [vmem:[%s942_s1 + $0x2d0] sm:$0xff]  ;;  %v135_v49 = vld [vmem:[%s942_s1 + $0x2c8] sm:$0xff] }
  0x22   :  { %270 = vmatpush.msrb.mxu0 %v125_v21  ;;  %221 = vmatpush.msra.mxu1 %v66_v9  ;;  %v155_v21 = vld [vmem:[%s942_s1 + $0x368] sm:$0xff]  ;;  %v149_v42 = vld [vmem:[%s942_s1 + $0x338] sm:$0xff]  ;;  %v188_v46 = vld [vmem:[%s942_s1 + $0x470] sm:$0xff] }
  0x23   :  { %242 = vmatpush.msra.mxu2 %v81_v63  ;;  %261 = vmatpush.msra.mxu3 %v98_v11  ;;  %v169_v43 = vld [vmem:[%s942_s1 + $0x3d8] sm:$0xff]  ;;  %v148_v47 = vld [vmem:[%s942_s1 + $0x330] sm:$0xff]  ;;  %v147_v50 = vld [vmem:[%s942_s1 + $0x328] sm:$0xff] }
  0x24   :  { %271 = vmatpush.msrb.mxu0 %v124_v26  ;;  %222 = vmatpush.msra.mxu1 %v65_v14  ;;  %v62_v26 = vld [vmem:[%s942_s1 + $0x80] sm:$0xff]  ;;  %v187_v52 = vld [vmem:[%s942_s1 + $0x468] sm:$0xff]  ;;  %v133_v57 = vld [vmem:[%s942_s1 + $0x2b8] sm:$0xff] }
  0x25   :  { %243 = vmatpush.msra.mxu2 %v80_v3  ;;  %262 = vmatpush.msra.mxu3 %v97_v15  ;;  %v134_v53 = vld [vmem:[%s942_s1 + $0x2c0] sm:$0xff]  ;;  %v145_v58 = vld [vmem:[%s942_s1 + $0x318] sm:$0xff]  ;;  %v132_v61 = vld [vmem:[%s942_s1 + $0x2b0] sm:$0xff] }
  0x26   :  { %272 = vmatpush.msrb.mxu0 %v123_v31  ;;  %223 = vmatpush.msra.mxu1 %v64_v18  ;;  %v140_v31 = vld [vmem:[%s942_s1 + $0x2f0] sm:$0xff]  ;;  %v146_v54 = vld [vmem:[%s942_s1 + $0x320] sm:$0xff]  ;;  %v185_v60 = vld [vmem:[%s942_s1 + $0x458] sm:$0xff] }
  0x27   :  { %244 = vmatpush.msra.mxu2 %v79_v6  ;;  %263 = vmatpush.msra.mxu3 %v96_v19  ;;  %v186_v56 = vld [vmem:[%s942_s1 + $0x460] sm:$0xff]  ;;  %v144_v62 = vld [vmem:[%s942_s1 + $0x310] sm:$0xff]  ;;  %v131_v1 = vld [vmem:[%s942_s1 + $0x2a8] sm:$0xff] }
  0x28   :  { %273 = vmatpush.msrb.mxu0 %v122_v40  ;;  %224 = vmatpush.msra.mxu1 %v63_v22  ;;  %v170_v40 = vld [vmem:[%s942_s1 + $0x3e0] sm:$0xff]  ;;  %v164_v63 = vld [vmem:[%s942_s1 + $0x3b0] sm:$0xff]  ;;  %v143_v2 = vld [vmem:[%s942_s1 + $0x308] sm:$0xff] }
  0x29   :  { %245 = vmatpush.msra.mxu2 %v78_v10  ;;  %v163_v3 = vld [vmem:[%s942_s1 + $0x3a8] sm:$0xff]  ;;  %v130_v6 = vld [vmem:[%s942_s1 + $0x2a0] sm:$0xff]  ;;  %v129_v10 = vld [vmem:[%s942_s1 + $0x298] sm:$0xff] }
  0x2a   :  { %274 = vmatpush.msrb.mxu0 %v121_v44  ;;  %225 = vmatpush.msra.mxu1 %v62_v26  ;;  %v189_v44 = vld [vmem:[%s942_s1 + $0x478] sm:$0xff]  ;;  %v183_v5 = vld [vmem:[%s942_s1 + $0x448] sm:$0xff]  ;;  %v142_v7 = vld [vmem:[%s942_s1 + $0x300] sm:$0xff] }
  0x2b   :  { %310 = vmatpush.msrb.mxu2 %v157_v13  ;;  %v182_v9 = vld [vmem:[%s942_s1 + $0x440] sm:$0xff]  ;;  %v161_v11 = vld [vmem:[%s942_s1 + $0x398] sm:$0xff]  ;;  %v128_v13 = vld [vmem:[%s942_s1 + $0x290] sm:$0xff] }
  0x2c   :  { %275 = vmatpush.msrb.mxu0 %v120_v48  ;;  %290 = vmatpush.msrb.mxu1 %v141_v28  ;;  %v168_v48 = vld [vmem:[%s942_s1 + $0x3d0] sm:$0xff]  ;;  %v158_v22 = vld [vmem:[%s942_s1 + $0x380] sm:$0xff]  ;;  %v175_v26 = vld [vmem:[%s942_s1 + $0x408] sm:$0xff] }
  0x2d   :  { %311 = vmatpush.msrb.mxu2 %v156_v17  ;;  %v160_v14 = vld [vmem:[%s942_s1 + $0x390] sm:$0xff]  ;;  %v159_v17 = vld [vmem:[%s942_s1 + $0x388] sm:$0xff] }
  0x2e   :  { %276 = vmatpush.msrb.mxu0 %v119_v51  ;;  %291 = vmatpush.msrb.mxu1 %v140_v31  ;;  %v167_v51 = vld [vmem:[%s942_s1 + $0x3c8] sm:$0xff]  ;;  %v180_v15 = vld [vmem:[%s942_s1 + $0x430] sm:$0xff] }
  0x2f   :  { %312 = vmatpush.msrb.mxu2 %v155_v21  ;;  %v126_v21 = vld [vmem:[%s942_s1 + $0x280] sm:$0xff] }
  0x30   :  { %277 = vmatpush.msrb.mxu0 %v118_v55  ;;  %292 = vmatpush.msrb.mxu1 %v139_v34  ;;  %v166_v55 = vld [vmem:[%s942_s1 + $0x3c0] sm:$0xff] }
  0x31   :  { %313 = vmatpush.msrb.mxu2 %v154_v25  ;;  %v176_v25 = vld [vmem:[%s942_s1 + $0x410] sm:$0xff] }
  0x32   :  { %278 = vmatpush.msrb.mxu0 %v117_v59  ;;  %v165_v59 = vld [vmem:[%s942_s1 + $0x3b8] sm:$0xff] }
  0x33   :  { %314 = vmatpush.msrb.mxu2 %v153_v29 }
  0x35   :  { %315 = vmatpush.msrb.mxu2 %v152_v32 }
  0x37   :  { %316 = vmatpush.msrb.mxu2 %v151_v35 }
  0x39   :  { %317 = vmatpush.msrb.mxu2 %v150_v39 }
  0x3b   :  { %318 = vmatpush.msrb.mxu2 %v149_v42  ;;  %v460_v42 = vmov 0  }
  0x3c   :  { %422 = vset.pattern.permute.xlu2 %v460_v42  ;;  %423 = vset.pattern.permute.xlu0 %v460_v42 }
  0x3d   :  { %319 = vmatpush.msrb.mxu2 %v148_v47 }
  0x3f   :  { %320 = vmatpush.msrb.mxu2 %v147_v50 }
  0x41   :  { %321 = vmatpush.msrb.mxu2 %v146_v54 }
  0x43   :  { %322 = vmatpush.msrb.mxu2 %v145_v58 }
  0x45   :  { %323 = vmatpush.msrb.mxu2 %v144_v62 }
  0x47   :  { %324 = vmatpush.msrb.mxu2 %v143_v2 }
  0x49   :  { %325 = vmatpush.msrb.mxu2 %v142_v7 }
  0x75   :  { %v14_v23 = vpop.xlane.xlu0 %13 }
  0x76   :  { %v15_v27 = vmul.f32 0.015625, %v14_v23  ;;  %v95_v23 = vld [vmem:[%s942_s1 + $0x188] sm:$0xff] }
  0x77   :  { %264 = vmatpush.msra.mxu3 %v95_v23  ;;  %v178_v23 = vld [vmem:[%s942_s1 + $0x420] sm:$0xff] }
  0x78   :  { %v19_v33 = vsub.f32 %v480_v0, %v15_v27  ;;  %v116_v0 = vld [vmem:[%s942_s1 + $0x230] sm:$0xff]  ;;  %v94_v27 = vld [vmem:[%s942_s1 + $0x180] sm:$0xff] }
  0x79   :  { %279 = vmatpush.msrb.mxu0 %v116_v0  ;;  %265 = vmatpush.msra.mxu3 %v94_v27  ;;  %v184_v0 = vld [vmem:[%s942_s1 + $0x450] sm:$0xff]  ;;  %v174_v27 = vld [vmem:[%s942_s1 + $0x400] sm:$0xff] }
  0x7a   :  { %v574_v36 = vsel %vm18_vm0, %v19_v33, 0.0  ;;  %v172_v33 = vld [vmem:[%s942_s1 + $0x3f0] sm:$0xff] }
  0x7b   :  { %37 = vrot.lane.b32.xlu2 %v574_v36, %s452_s15  ;;  %28 = vrot.lane.b32.xlu1 %v574_v36, %s453_s16  ;;  %v21_v38 = vmul.f32 %v574_v36, %v574_v36 }
  0x7c   :  { %25 = vrot.lane.b32.xlu0 %v574_v36, %s454_s20  ;;  %280 = vmatpush.msrb.mxu0 %v115_v4 }
  0x7d   :  { %206 = vmatmul.f32.vlgmr.msra.gmra.mxu0 %v21_v38  ;;  %330 = vmatpush.msrb.mxu3 %v173_v30  ;;  %v138_v38 = vld [vmem:[%s942_s1 + $0x2e0] sm:$0xff] }
  0x7e   :  { %281 = vmatpush.msrb.mxu0 %v114_v8  ;;  %293 = vmatpush.msrb.mxu1 %v138_v38  ;;  %v162_v8 = vld [vmem:[%s942_s1 + $0x3a0] sm:$0xff] }
  0x7f   :  { %331 = vmatpush.msrb.mxu3 %v172_v33 }
  0x80   :  { %282 = vmatpush.msrb.mxu0 %v113_v12  ;;  %294 = vmatpush.msrb.mxu1 %v137_v41  ;;  %v181_v12 = vld [vmem:[%s942_s1 + $0x438] sm:$0xff] }
  0x81   :  { %332 = vmatpush.msrb.mxu3 %v171_v37 }
  0x82   :  { %283 = vmatpush.msrb.mxu0 %v112_v16  ;;  %295 = vmatpush.msrb.mxu1 %v136_v45  ;;  %v127_v16 = vld [vmem:[%s942_s1 + $0x288] sm:$0xff] }
  0x83   :  { %31 = vrot.lane.b32.xlu2 %v574_v36, %s455_s17  ;;  %22 = vrot.lane.b32.xlu1 %v574_v36, %s456_s18 }
  0x84   :  { %284 = vmatpush.msrb.mxu0 %v111_v20  ;;  %333 = vmatpush.msrb.mxu3 %v170_v40  ;;  %v179_v20 = vld [vmem:[%s942_s1 + $0x428] sm:$0xff] }
  0x85   :  { %296 = vmatpush.msrb.mxu1 %v135_v49 }
  0x86   :  { %285 = vmatpush.msrb.mxu0 %v110_v24  ;;  %334 = vmatpush.msrb.mxu3 %v169_v43  ;;  %v177_v24 = vld [vmem:[%s942_s1 + $0x418] sm:$0xff]  ;;  %s461_s1 = smov [#allocation2]  }
  0x87   :  { %297 = vmatpush.msrb.mxu1 %v134_v53  ;;  %s401_s23 = sshll.u32 %s461_s1, 4  ;;  %s402_s23 = int_to_ptr.vmem [resolvable:$true] %s401_s23 }
  0x88   :  { %350 = vmatpush.msra.mxu0 %v189_v44  ;;  %335 = vmatpush.msrb.mxu3 %v168_v48 }
  0x89   :  { %298 = vmatpush.msrb.mxu1 %v133_v57 }
  0x8a   :  { %351 = vmatpush.msra.mxu0 %v188_v46  ;;  %336 = vmatpush.msrb.mxu3 %v167_v51 }
  0x8b   :  { %34 = vrot.lane.b32.xlu2 %v574_v36, %s457_s0  ;;  %40 = vrot.lane.b32.xlu1 %v574_v36, %s458_s19 }
  0x8c   :  { %352 = vmatpush.msra.mxu0 %v187_v52  ;;  %337 = vmatpush.msrb.mxu3 %v166_v55 }
  0x8d   :  { %299 = vmatpush.msrb.mxu1 %v132_v61 }
  0x8e   :  { %353 = vmatpush.msra.mxu0 %v186_v56  ;;  %338 = vmatpush.msrb.mxu3 %v165_v59 }
  0x8f   :  { %300 = vmatpush.msrb.mxu1 %v131_v1 }
  0x90   :  { %354 = vmatpush.msra.mxu0 %v185_v60  ;;  %339 = vmatpush.msrb.mxu3 %v164_v63 }
  0x91   :  { %301 = vmatpush.msrb.mxu1 %v130_v6 }
  0x92   :  { %355 = vmatpush.msra.mxu0 %v184_v0  ;;  %340 = vmatpush.msrb.mxu3 %v163_v3 }
  0x93   :  { %43 = vrot.lane.b32.xlu1 %v574_v36, %s459_s24  ;;  %302 = vmatpush.msrb.mxu1 %v129_v10 }
  0x94   :  { %356 = vmatpush.msra.mxu0 %v183_v5  ;;  %341 = vmatpush.msrb.mxu3 %v162_v8 }
  0x95   :  { %303 = vmatpush.msrb.mxu1 %v128_v13 }
  0x96   :  { %357 = vmatpush.msra.mxu0 %v182_v9  ;;  %342 = vmatpush.msrb.mxu3 %v161_v11 }
  0x97   :  { %304 = vmatpush.msrb.mxu1 %v127_v16 }
  0x98   :  { %358 = vmatpush.msra.mxu0 %v181_v12  ;;  %343 = vmatpush.msrb.mxu3 %v160_v14 }
  0x99   :  { %305 = vmatpush.msrb.mxu1 %v126_v21 }
  0x9a   :  { %359 = vmatpush.msra.mxu0 %v180_v15  ;;  %344 = vmatpush.msrb.mxu3 %v159_v17 }
  0x9c   :  { %360 = vmatpush.msra.mxu0 %v179_v20  ;;  %345 = vmatpush.msrb.mxu3 %v158_v22 }
  0x9e   :  { %361 = vmatpush.msra.mxu0 %v178_v23 }
  0xa0   :  { %362 = vmatpush.msra.mxu0 %v177_v24 }
  0xa2   :  { %363 = vmatpush.msra.mxu0 %v176_v25 }
  0xa4   :  { %364 = vmatpush.msra.mxu0 %v175_v26 }
  0xa6   :  { %365 = vmatpush.msra.mxu0 %v174_v27 }
  0xd5   :  { %v38_v4 = vpop.permute.xlu2 %37 }
  0xd6   :  { %v39_v34 = vmul.f32 %v38_v4, %v574_v36 }
  0xdd   :  { %v32_v18 = vpop.permute.xlu2 %31 }
  0xde   :  { %v33_v19 = vmul.f32 %v32_v18, %v574_v36 }
  0xe0   :  { %286 = vmatmul.f32.vlgmr.msrb.gmra.mxu0 %v33_v19 }
  0xe5   :  { %v35_v35 = vpop.permute.xlu2 %34 }
  0xe6   :  { %v36_v38 = vmul.f32 %v35_v35, %v574_v36 }
  0xed   :  { %v29_v28 = vpop.permute.xlu1 %28 }
  0xee   :  { %v30_v29 = vmul.f32 %v29_v28, %v574_v36  ;;  %v26_v30 = vpop.permute.xlu0 %25 }
  0xef   :  { %v27_v31 = vmul.f32 %v26_v30, %v574_v36 }
  0xf0   :  { %266 = vmatmul.f32.vlgmr.msra.gmra.mxu3 %v30_v29 }
  0xf1   :  { %246 = vmatmul.f32.vlgmr.msra.gmra.mxu2 %v27_v31 }
  0xf5   :  { %v23_v32 = vpop.permute.xlu1 %22 }
  0xf6   :  { %v24_v33 = vmul.f32 %v23_v32, %v574_v36 }
  0xf8   :  { %226 = vmatmul.f32.vlgmr.msra.gmra.mxu1 %v24_v33 }
  0xf9   :  { %326 = vmatmul.f32.vlgmr.msrb.gmra.mxu2 %v39_v34 }
  0xfa   :  { %v207_v43 = vpop.f32.mrf.mxu0 }
  0xfd   :  { %v41_v37 = vpop.permute.xlu1 %40 }
  0xfe   :  { %v42_v39 = vmul.f32 %v41_v37, %v574_v36 }
 0x100   :  { %306 = vmatmul.f32.vlgmr.msrb.gmra.mxu1 %v36_v38  ;;  %346 = vmatmul.f32.vlgmr.msrb.gmra.mxu3 %v42_v39 }
 0x105   :  { %v44_v40 = vpop.permute.xlu1 %43 }
 0x106   :  { %v45_v41 = vmul.f32 %v44_v40, %v574_v36 }
 0x108   :  { %366 = vmatmul.f32.vlgmr.msra.gmra.mxu0 %v45_v41 }
 0x15d   :  { %v287_v50 = vpop.f32.mrf.mxu0 }
 0x173   :  { %v267_v48 = vpop.f32.mrf.mxu3 }
 0x174   :  { %v247_v46 = vpop.f32.mrf.mxu2 }
 0x175   :  { %v227_v44 = vpop.f32.mrf.mxu1 }
 0x176   :  { %v228_v45 = vadd.f32 %v227_v44, %v207_v43 }
 0x178   :  { %v248_v47 = vadd.f32 %v247_v46, %v228_v45 }
 0x17a   :  { %v268_v49 = vadd.f32 %v267_v48, %v248_v47 }
 0x17c   :  { %v288_v51 = vadd.f32 %v287_v50, %v268_v49  ;;  %v327_v54 = vpop.f32.mrf.mxu2 }
 0x17d   :  { %v307_v52 = vpop.f32.mrf.mxu1 }
 0x17e   :  { %v308_v53 = vadd.f32 %v307_v52, %v288_v51 }
 0x180   :  { %v328_v55 = vadd.f32 %v327_v54, %v308_v53 }
 0x183   :  { %v347_v56 = vpop.f32.mrf.mxu3 }
 0x184   :  { %v348_v57 = vadd.f32 %v347_v56, %v328_v55 }
 0x185   :  { %v367_v36 = vpop.f32.mrf.mxu0 }
 0x186   :  { %v368_v58 = vadd.f32 %v367_v36, %v348_v57 }
 0x188   :  { %424 = vrcp.f32 %v368_v58  ;;  %v381_v62 = vand.u32 2147483648, %v368_v58  ;;  %v379_v0 = vand.u32 2147483647, %v368_v58  ;;  %vm375_vm2 = vweird.f32 %v368_v58 }
 0x18a   :  { %v382_v2 = vor.u32 1.1754944e-38, %v381_v62  ;;  %vm380_vm4 = vcmp.eq.f32.partialorder %v379_v0, 8.507059e+37 }
 0x18e   :  { %v425_v59 = vpop.eup %424 }
 0x18f   :  { %v371_v60 = vmul.f32 %v425_v59, %v368_v58  ;;  %vm376_vm1 = vweird.f32 %v425_v59 }
 0x190   :  { %vm377_vm3 = vmor %vm375_vm2, %vm376_vm1 }
 0x191   :  { %v372_v61 = vsub.f32 1.0, %v371_v60 }
 0x193   :  { %v373_v63 = vmul.f32 %v425_v59, %v372_v61 }
 0x195   :  { %v374_v1 = vadd.f32 %v425_v59, %v373_v63 }
 0x197   :  { %v378_v3 = vsel %vm377_vm3, %v425_v59, %v374_v1 }
 0x198   :  { %v383_v4 = vsel %vm380_vm4, %v382_v2, %v378_v3 }
 0x199   :  { %386 = vperm.xlu2 %422, %v383_v4  }
 0x1f3   :  { %v387_v5 = vpop.permute.xlu2 %386 }
 0x1f4   :  { %v389_v6 = vmul.f32 %v387_v5, %v368_v58 }
 0x1f6   :  { %391 = vrot.lane.b32.xlu0 %v389_v6, %s456_s18 }
 0x268   :  { %v392_v7 = vpop.permute.xlu0 %391 }
 0x269   :  { %395 = vst.msk [vmem:[#allocation2] sm:$0xff] %vm394_vm5, %v392_v7 }
 0x26a   :  { %406 = dma.vmem_to_hbm [thread:$0]  %s402_s23, 128, %s404_s26, [#allocation3]  }
 0x26b   :  { %450 = dma.done.wait [#allocation3], 128  }
 0x26c   :  { %451 = vsyncadd [#allocation3], 4294967168 }
 0x26d   :  { %411 = vsyncpa [#allocation3], 1 }

</bundles_post_ra>
